<compile_context>
chip_gen: v6e
topology: v6e:2x2x1
jax: 0.10.0
libtpu: 0.0.40
codegen_flags: <defaults>
</compile_context>

<pallas_src>
import functools

import jax
import jax.numpy as jnp
from jax.experimental import pallas as pl
from jax.experimental.pallas import tpu as pltpu


_PIPELINE_VMEM_BUDGET = 6 * 1024 * 1024   # bytes for double-buffered input blocks
_VMEM_LIMIT_BYTES = 32 * 1024 * 1024      # explicit scoped-VMEM limit (all gens)
_MAX_TILE_ROWS = 4096                     # bounds f32 intermediates in VMEM


def _round_up(x: int, m: int) -> int:
    return ((x + m - 1) // m) * m


def _select_tile_rows(n, c, in_dtype, max_tile_rows=None):
    """Pick a batch tile that fits the VMEM budget for this dtype / class count."""
    itemsize = jnp.dtype(in_dtype).itemsize
    granule = max(8, 32 // itemsize)          # sublane granule: 8 f32, 16 bf16, 32 int8
    lanes_c = _round_up(c, 128)
    # Per-row VMEM cost of the pipelined blocks: lane-padded logits row plus the
    # (tn, 1) int32 targets block which lane-pads to 128 words per row.
    per_row = lanes_c * itemsize + 128 * 4
    tn = _PIPELINE_VMEM_BUDGET // (2 * per_row)          # x2: double buffering
    tn = max(granule, (tn // granule) * granule)
    tn = min(tn, _MAX_TILE_ROWS)
    if max_tile_rows is not None:
        tn = min(tn, max(granule, (int(max_tile_rows) // granule) * granule))
    # v7x megacore: keep >= 2 grid steps when the batch is large enough so the
    # "parallel" axis can be sharded across both TensorCores.
    if n >= 2 * granule:
        tn = min(tn, _round_up(pl.cdiv(n, 2), granule))
    if tn >= n:
        tn = n   # single block exactly equal to the array dim (always legal)
    return tn


def _focal_loss_kernel(x_ref, t_ref, alpha_ref, loss_ref, *, gamma, n_total, tile_rows):
    x = x_ref[...].astype(jnp.float32)            # (TN, C) logits (upcast in VMEM)
    t = t_ref[...]                                # (TN, 1) int32 class ids
    alpha = alpha_ref[...].astype(jnp.float32)    # (1, C)

    # Row-wise stable log-sum-exp; xm reused for both exp() and the gather.
    m = jnp.max(x, axis=1, keepdims=True)                      # (TN, 1)
    xm = x - m                                                  # (TN, C)
    s = jnp.sum(jnp.exp(xm), axis=1, keepdims=True)             # (TN, 1)

    # One-hot class mask built once (equivalent of scatter_), reused twice.
    col = jax.lax.broadcasted_iota(jnp.int32, x.shape, 1)       # (TN, C)
    mask = (col == t).astype(jnp.float32)                       # (TN, C)

    xm_t = jnp.sum(xm * mask, axis=1, keepdims=True)            # x_t - m
    alpha_t = jnp.sum(alpha * mask, axis=1, keepdims=True)      # (TN, 1)

    log_p = xm_t - jnp.log(s)                                   # log p_t, stable
    p_t = jnp.exp(log_p)
    one_minus_p = 1.0 - p_t

    # Specialize pow for small integer gamma (default gamma=2).
    g = float(gamma)
    if g == 0.0:
        focal = jnp.ones_like(one_minus_p)
    elif g.is_integer() and 1.0 <= g <= 8.0:
        focal = one_minus_p
        for _ in range(int(g) - 1):
            focal = focal * one_minus_p
    else:
        focal = jnp.power(one_minus_p, g)

    batch_loss = -alpha_t * focal * log_p                       # (TN, 1)

    # Zero padding rows of the last tile BEFORE the in-tile reduction, so
    # garbage rows can never leak NaN/inf into the partial sum.
    row = jax.lax.broadcasted_iota(jnp.int32, batch_loss.shape, 0)
    global_row = pl.program_id(0) * tile_rows + row
    batch_loss = jnp.where(global_row < n_total, batch_loss, 0.0)

    # Per-tile partial sum -> one scalar store per grid step.
    loss_ref[...] = jnp.sum(batch_loss, axis=(0, 1), keepdims=True)   # (1, 1)


def focal_loss(inputs, targets, alpha, gamma=2.0, size_average=True,
               max_tile_rows=None):
    """inputs: (N, C) float logits (f32 or bf16); targets: (N,) ints; alpha: (C,)."""
    n, c = inputs.shape
    tn = _select_tile_rows(n, c, inputs.dtype, max_tile_rows)
    num_tiles = pl.cdiv(n, tn)

    targets2d = targets.reshape(n, 1).astype(jnp.int32)
    alpha2d = jnp.asarray(alpha, jnp.float32).reshape(1, c)

    kernel = functools.partial(
        _focal_loss_kernel, gamma=float(gamma), n_total=n, tile_rows=tn
    )

    itemsize = jnp.dtype(inputs.dtype).itemsize
    cost = pl.CostEstimate(
        flops=6 * n * c,
        transcendentals=n * c + 3 * n,
        bytes_accessed=n * c * itemsize + n * 4 + c * 4 + num_tiles * 4,
    )

    per_tile = pl.pallas_call(
        kernel,
        out_shape=jax.ShapeDtypeStruct((num_tiles, 1), jnp.float32),
        grid=(num_tiles,),
        in_specs=[
            pl.BlockSpec((tn, c), lambda i: (i, 0)),   # logits tile
            pl.BlockSpec((tn, 1), lambda i: (i, 0)),   # targets tile
            pl.BlockSpec((1, c), lambda i: (0, 0)),    # alpha (replicated)
        ],
        out_specs=pl.BlockSpec((1, 1), lambda i: (i, 0)),   # per-tile scalar
        compiler_params=pltpu.CompilerParams(
            dimension_semantics=("parallel",),
            vmem_limit_bytes=_VMEM_LIMIT_BYTES,
        ),
        cost_estimate=cost,
    )(inputs, targets2d, alpha2d)   # no wrapper-side cast: kernel casts in VMEM

    total = jnp.sum(per_tile)
    return total / n if size_average else total


def focal_loss_reference(inputs, targets, alpha, gamma=2.0, size_average=True):
    """Pure-JAX reference mirroring the PyTorch module."""
    n, c = inputs.shape
    p = jax.nn.softmax(inputs.astype(jnp.float32), axis=1)
    mask = jax.nn.one_hot(targets, c, dtype=jnp.float32)
    probs = jnp.sum(p * mask, axis=1, keepdims=True)
    alpha_t = jnp.asarray(alpha, jnp.float32).reshape(-1)[targets].reshape(-1, 1)
    log_p = jnp.log(probs)
    batch_loss = -alpha_t * jnp.power(1.0 - probs, gamma) * log_p
    return jnp.mean(batch_loss) if size_average else jnp.sum(batch_loss)


if __name__ == "__main__":
    key = jax.random.PRNGKey(0)
    C = 10
    alpha = jnp.ones((C,), dtype=jnp.float32)  # module default: ones(class_num, 1)

    k_x, k_t, k_x2, k_t2 = jax.random.split(key, 4)

    # Case 1: small batch (matches the module's toy usage), single tile.
    N1 = 8
    inputs1 = jax.random.normal(k_x, (N1, C), dtype=jnp.float32)
    targets1 = jax.random.randint(k_t, (N1,), 0, C, dtype=jnp.int32)
    loss1 = jax.block_until_ready(focal_loss(inputs1, targets1, alpha))
    ref1 = focal_loss_reference(inputs1, targets1, alpha)
    assert jnp.allclose(loss1, ref1, rtol=1e-5, atol=1e-5), (loss1, ref1)

    # Case 2: batch not a multiple of the tile, forced small tiles ->
    # exercises multi-tile grid, last-tile row masking, per-tile partial sums.
    N2 = 37
    inputs2 = jax.random.normal(k_x2, (N2, C), dtype=jnp.float32)
    targets2 = jax.random.randint(k_t2, (N2,), 0, C, dtype=jnp.int32)
    loss2 = jax.block_until_ready(
        focal_loss(inputs2, targets2, alpha, max_tile_rows=16))
    ref2 = focal_loss_reference(inputs2, targets2, alpha)
    assert jnp.allclose(loss2, ref2, rtol=1e-5, atol=1e-5), (loss2, ref2)

    # Case 3: auto tile selection (v7x >=2-tile split path) + sum reduction.
    loss3 = jax.block_until_ready(
        focal_loss(inputs2, targets2, alpha, size_average=False))
    ref3 = focal_loss_reference(inputs2, targets2, alpha, size_average=False)
    assert jnp.allclose(loss3, ref3, rtol=1e-5, atol=1e-5), (loss3, ref3)

    # Case 4: bf16 logits (halved HBM traffic; 16-row sublane granule path).
    inputs2_bf16 = inputs2.astype(jnp.bfloat16)
    loss4 = jax.block_until_ready(focal_loss(inputs2_bf16, targets2, alpha))
    ref4 = focal_loss_reference(inputs2_bf16, targets2, alpha)
    assert jnp.allclose(loss4, ref4, rtol=1e-4, atol=1e-5), (loss4, ref4)

    print("KERNEL_OK")
</pallas_src>

<mosaic_0001>
module attributes {stable_mosaic.version = 11 : i64} {
  func.func @_focal_loss_kernel(%arg0: i32, %arg1: memref<8x10xf32, #tpu.memory_space<vmem>>, %arg2: memref<8x1xi32, #tpu.memory_space<vmem>>, %arg3: memref<1x10xf32, #tpu.memory_space<vmem>>, %arg4: memref<1x1xf32, #tpu.memory_space<vmem>>) attributes {dimension_semantics = [#tpu.dimension_semantics<parallel>], iteration_bounds = array<i64: 1>, scalar_prefetch = 0 : i64, scratch_operands = 0 : i64, tpu.core_type = #tpu.core_type<tc>, window_params = [{transform_indices = @transform_0, window_bounds = array<i64: 8, 10>}, {transform_indices = @transform_1, window_bounds = array<i64: 8, 1>}, {pipeline_mode = #tpu.pipeline_mode<synchronous>, transform_indices = @transform_2, window_bounds = array<i64: 1, 10>}, {transform_indices = @transform_3, window_bounds = array<i64: 1, 1>}]} {
    %c0 = arith.constant 0 : index
    %c0_0 = arith.constant 0 : index
    %0 = vector.load %arg1[%c0, %c0_0] : memref<8x10xf32, #tpu.memory_space<vmem>>, vector<8x10xf32>
    %c0_1 = arith.constant 0 : index
    %c0_2 = arith.constant 0 : index
    %1 = vector.load %arg2[%c0_1, %c0_2] : memref<8x1xi32, #tpu.memory_space<vmem>>, vector<8x1xi32>
    %c0_3 = arith.constant 0 : index
    %c0_4 = arith.constant 0 : index
    %2 = vector.load %arg3[%c0_3, %c0_4] : memref<1x10xf32, #tpu.memory_space<vmem>>, vector<1x10xf32>
    %cst = arith.constant dense<0xFF800000> : vector<8xf32>
    %3 = vector.multi_reduction <maximumf>, %0, %cst [1] : vector<8x10xf32> to vector<8xf32>
    %4 = vector.shape_cast %3 : vector<8xf32> to vector<8x1xf32>
    %5 = vector.broadcast %4 : vector<8x1xf32> to vector<8x10xf32>
    %6 = arith.subf %0, %5 : vector<8x10xf32>
    %7 = math.exp %6 : vector<8x10xf32>
    %cst_5 = arith.constant dense<0.000000e+00> : vector<8xf32>
    %8 = vector.multi_reduction <add>, %7, %cst_5 [1] : vector<8x10xf32> to vector<8xf32>
    %9 = vector.shape_cast %8 : vector<8xf32> to vector<8x1xf32>
    %10 = tpu.iota {dimensions = array<i32: 1>} : vector<8x10xi32>
    %11 = vector.broadcast %1 : vector<8x1xi32> to vector<8x10xi32>
    %12 = arith.cmpi eq, %10, %11 : vector<8x10xi32>
    %13 = arith.extui %12 : vector<8x10xi1> to vector<8x10xi32>
    %14 = arith.sitofp %13 : vector<8x10xi32> to vector<8x10xf32>
    %15 = arith.mulf %6, %14 : vector<8x10xf32>
    %cst_6 = arith.constant dense<0.000000e+00> : vector<8xf32>
    %16 = vector.multi_reduction <add>, %15, %cst_6 [1] : vector<8x10xf32> to vector<8xf32>
    %17 = vector.shape_cast %16 : vector<8xf32> to vector<8x1xf32>
    %18 = vector.broadcast %2 : vector<1x10xf32> to vector<8x10xf32>
    %19 = arith.mulf %18, %14 : vector<8x10xf32>
    %cst_7 = arith.constant dense<0.000000e+00> : vector<8xf32>
    %20 = vector.multi_reduction <add>, %19, %cst_7 [1] : vector<8x10xf32> to vector<8xf32>
    %21 = vector.shape_cast %20 : vector<8xf32> to vector<8x1xf32>
    %22 = math.log %9 : vector<8x1xf32>
    %23 = arith.subf %17, %22 : vector<8x1xf32>
    %24 = math.exp %23 : vector<8x1xf32>
    %cst_8 = arith.constant 1.000000e+00 : f32
    %25 = vector.broadcast %cst_8 : f32 to vector<8x1xf32>
    %26 = arith.subf %25, %24 : vector<8x1xf32>
    %27 = arith.mulf %26, %26 : vector<8x1xf32>
    %cst_9 = arith.constant 0.000000e+00 : f32
    %28 = vector.broadcast %cst_9 : f32 to vector<8x1xf32>
    %29 = arith.subf %28, %21 : vector<8x1xf32>
    %30 = arith.mulf %29, %27 : vector<8x1xf32>
    %31 = arith.mulf %30, %23 : vector<8x1xf32>
    %32 = tpu.iota {dimensions = array<i32: 0>} : vector<8x1xi32>
    %c8_i32 = arith.constant 8 : i32
    %33 = arith.muli %arg0, %c8_i32 : i32
    %34 = vector.broadcast %33 : i32 to vector<8x1xi32>
    %35 = arith.addi %34, %32 : vector<8x1xi32>
    %c8_i32_10 = arith.constant 8 : i32
    %36 = vector.broadcast %c8_i32_10 : i32 to vector<8x1xi32>
    %37 = arith.cmpi slt, %35, %36 : vector<8x1xi32>
    %cst_11 = arith.constant 0.000000e+00 : f32
    %38 = vector.broadcast %cst_11 : f32 to vector<8x1xf32>
    %39 = arith.select %37, %31, %38 : vector<8x1xi1>, vector<8x1xf32>
    %40 = vector.shape_cast %39 : vector<8x1xf32> to vector<1x8x1xf32>
    %cst_12 = arith.constant dense<0.000000e+00> : vector<1xf32>
    %41 = vector.multi_reduction <add>, %40, %cst_12 [1, 2] : vector<1x8x1xf32> to vector<1xf32>
    %42 = vector.shape_cast %41 : vector<1xf32> to vector<1x1x1xf32>
    %43 = vector.extract %42[0, 0, 0] : f32 from vector<1x1x1xf32>
    %44 = vector.broadcast %43 : f32 to vector<1x1xf32>
    %c0_13 = arith.constant 0 : index
    %c0_14 = arith.constant 0 : index
    %45 = vector.load %arg4[%c0_13, %c0_14] : memref<1x1xf32, #tpu.memory_space<vmem>>, vector<1x1xf32>
    tpu.vector_store %arg4[%c0_13, %c0_14], %44 {strides = array<i32>} : memref<1x1xf32, #tpu.memory_space<vmem>>, vector<1x1xf32>,
    return
  }
  func.func @transform_0(%arg0: i32) -> (i32, i32) {
    %c0_i32 = arith.constant 0 : i32
    %c0_i32_0 = arith.constant 0 : i32
    return %arg0, %c0_i32 : i32, i32
  }
  func.func @transform_1(%arg0: i32) -> (i32, i32) {
    %c0_i32 = arith.constant 0 : i32
    %c0_i32_0 = arith.constant 0 : i32
    return %arg0, %c0_i32 : i32, i32
  }
  func.func @transform_2(%arg0: i32) -> (i32, i32) {
    %c0_i32 = arith.constant 0 : i32
    %c0_i32_0 = arith.constant 0 : i32
    %c0_i32_1 = arith.constant 0 : i32
    return %c0_i32, %c0_i32_0 : i32, i32
  }
  func.func @transform_3(%arg0: i32) -> (i32, i32) {
    %c0_i32 = arith.constant 0 : i32
    %c0_i32_0 = arith.constant 0 : i32
    return %arg0, %c0_i32 : i32, i32
  }
}

</mosaic_0001>

<bundles_post_ra>
// kernel: tpu_custom_call.1
= control target key start
LH: loop header
LB: loop body
LE: loop exit
PB: predicated region body
PF: predicated region fallthrough
CT: control target
= control target key end

     0   :  { %vm18_vm0 = vcmask 80896   ;;  %s170_s0 = inlined_call_operand.vmem [shape: f32[8,10], index: 0, kind: input, shape index: {}]   ;;  %s171_s1 = inlined_call_operand.vmem [shape: s32[8,1], index: 1, kind: input, shape index: {}]   ;;  %s172_s2 = inlined_call_operand.vmem [shape: f32[1,10], index: 2, kind: input, shape index: {}]   ;;  %s173_s3 = inlined_call_operand.hbm [shape: f32[1,1], index: 3, kind: output, shape index: {}]  }
   0x1   :  { %v15_v0 = vld [vmem:[%s170_s0] sm:$0xff] }
   0x2   :  { %8 = vsyncpa [#allocation3], 0  ;;  %v19_v1 = vsel %vm18_vm0, %v15_v0, -inf  ;;  %v131_v2 = vmov 0   ;;  %v16_v3 = vld [vmem:[%s171_s1] sm:$0xff]  ;;  %v28_v7 = vlaneseq  ;;  %v132_v10 = vmov 0.0  }
   0x3   :  { %102 = vset.pattern.permute.xlu0 %v131_v2  ;;  %v96_v13 = vld [vmem:[%s172_s2] ss:$0 sm:$0xff]  ;;  %vm67_vm2 = vcmask 7168   ;;  %s133_s1 = smov [#allocation2]   ;;  %vm79_vm3 = vcmask 0  }
   0x4   :  { %20 = vmax.xlane.f32.xlu0 %v19_v1  ;;  %v29_v8 = vand.u32 127, %v28_v7  ;;  %s87_s2 = sshll.u32 %s133_s1, 4  ;;  %s88_s2 = int_to_ptr.vmem [resolvable:$true] %s87_s2 }
   0x5   :  { %s109_s18 = scalar_lea.vmem %s88_s2, 16  ;;  %s113_s19 = scalar_lea.vmem %s88_s2, 32 }
   0x6   :  { %p110_p0 = scmp.ne.s32.totalorder %s88_s2, %s109_s18  ;;  %p114_p1 = scmp.lt.s32.totalorder %s88_s2, %s88_s2 }
   0x7   :  { %p115_p2 = scmp.lt.s32.totalorder %s113_s19, %s109_s18 }
   0x9   :  { %p116_p3 = por %p115_p2, %p114_p1 }
   0xb   :  { %p117_p4 = pnand %p116_p3, %p110_p0 }
  0x1a   :  { %31 = vperm.xlu0 %102, %v16_v3  }
  0x8d   :  { %v21_v4 = vpop.xlane.xlu0 %20 }
  0x8e   :  { %v22_v5 = vsub.f32 %v15_v0, %v21_v4 }
  0x90   :  { %v23_v6 = vmul.f32 1.442695, %v22_v5 }
  0x92   :  { %103 = vpow2.f32 %v23_v6 }
  0x95   :  { %v32_v9 = vpop.permute.xlu0 %31 }
  0x96   :  { %vm33_vm1 = vcmp.eq.s32.totalorder %v29_v8, %v32_v9 }
  0x97   :  { %v95_v11 = vsel %vm33_vm1, 1.0, %v132_v10 }
  0x98   :  { %v36_v15 = vmul.f32 %v95_v11, %v22_v5  ;;  %v46_v16 = vmul.f32 %v96_v13, %v95_v11 }
  0x9a   :  { %v37_v17 = vsel %vm18_vm0, %v36_v15, 0.0  ;;  %v47_v18 = vsel %vm18_vm0, %v46_v16, 0.0 }
  0x9f   :  { %v104_v12 = vpop.eup %103 }
  0xa0   :  { %v25_v14 = vsel %vm18_vm0, %v104_v12, 0.0 }
  0xa1   :  { %26 = vadd.xlane.f32.xlu1 %v25_v14 }
  0xa5   :  { %38 = vadd.xlane.f32.xlu1 %v37_v17 }
  0xa9   :  { %48 = vadd.xlane.f32.xlu1 %v47_v18 }
 0x12a   :  { %v27_v19 = vpop.xlane.xlu1 %26 }
 0x12b   :  { %105 = vlog2.f32 %v27_v19 }
 0x12e   :  { %v39_v22 = vpop.xlane.xlu1 %38 }
 0x132   :  { %v49_v26 = vpop.xlane.xlu1 %48 }
 0x133   :  { %v57_v29 = vsub.f32 0.0, %v49_v26 }
 0x138   :  { %v106_v20 = vpop.eup %105 }
 0x139   :  { %v51_v21 = vmul.f32 0.6931472, %v106_v20 }
 0x13b   :  { %v52_v23 = vsub.f32 %v39_v22, %v51_v21 }
 0x13d   :  { %v53_v24 = vmul.f32 1.442695, %v52_v23 }
 0x13f   :  { %107 = vpow2.f32 %v53_v24 }
 0x14c   :  { %v108_v25 = vpop.eup %107 }
 0x14d   :  { %v55_v27 = vsub.f32 1.0, %v108_v25 }
 0x14f   :  { %v56_v28 = vmul.f32 %v55_v27, %v55_v27 }
 0x151   :  { %v58_v30 = vmul.f32 %v57_v29, %v56_v28 }
 0x153   :  { %v59_v31 = vmul.f32 %v58_v30, %v52_v23 }
 0x155   :  { %v68_v32 = vsel %vm67_vm2, %v59_v31, 0.0 }
 0x156   :  { %69 = vadd.xlane.f32.xlu1 %v68_v32 }
 0x1df   :  { %v70_v33 = vpop.xlane.xlu1 %69 }
 0x1e0   :  { %v71_v34 = vrot.slane %v70_v33, 4 }
 0x1e2   :  { %v72_v35 = vadd.f32 %v71_v34, %v70_v33 }
 0x1e4   :  { %v73_v36 = vrot.slane %v72_v35, 2 }
 0x1e6   :  { %v74_v37 = vadd.f32 %v73_v36, %v72_v35 }
 0x1e8   :  { %v75_v38 = vrot.slane %v74_v37, 1 }
 0x1ea   :  { %v76_v39 = vadd.f32 %v75_v38, %v74_v37 }
 0x1ec   :  { %97 = vpush %v76_v39 }
 0x21d   :  { %s98_s17 = spop %97 }
 0x21e   :  { %v78_v40 = vstv %s98_s17 }
 0x21f   :  { %80 = vst.msk [vmem:[#allocation2] sm:$0x1] %vm79_vm3, %v78_v40 }
 0x220   :  { %120 = shalt.err (!%p117_p4)
}
 0x221   :  { %90 = dma.vmem_to_hbm [thread:$0]  %s88_s2, 16, %s173_s3, [#allocation3]  }
 0x222   :  { %129 = dma.done.wait [#allocation3], 16  }
 0x223   :  { %130 = vsyncadd [#allocation3], 4294967280 }
 0x224   :  { %94 = vsyncpa [#allocation3], 1 }

</bundles_post_ra>
